<compile_context>
chip_gen: v7x
topology: tpu7x:2x2x1
jax: 0.10.0
libtpu: 0.0.40
codegen_flags: <defaults>
</compile_context>

<pallas_src>
import functools
import math

import jax
import jax.numpy as jnp
from jax.experimental import pallas as pl
from jax.experimental.pallas import tpu as pltpu

_VMEM_LIMIT = 48 * 1024 * 1024  # explicit scoped-VMEM limit; safe on v5e/v6e/v7x


# ---------------------------------------------------------------------------- #
# Helpers
# ---------------------------------------------------------------------------- #
def _tile(dim, preferred, align):
    """Largest tile <= preferred that divides `dim` and is a multiple of `align`;
    falls back to the full dimension (always a legal block shape)."""
    if dim <= preferred:
        return dim
    t = (preferred // align) * align
    while t >= align:
        if dim % t == 0:
            return t
        t -= align
    return dim


def _gelu_tanh(x):
    # TODO(synk): PyTorch nn.GELU default is the exact erf form; the tanh
    # approximation is used in-kernel because erf is not guaranteed to lower in
    # Mosaic.  Max abs deviation ~1e-3.
    c = math.sqrt(2.0 / math.pi)
    return 0.5 * x * (1.0 + jnp.tanh(c * (x + 0.044715 * x * x * x)))


# ---------------------------------------------------------------------------- #
# Pallas kernels
# ---------------------------------------------------------------------------- #
def _linear_kernel(x_ref, w_ref, b_ref, o_ref, acc_ref):
    """o = x @ w + b, K-tiled with an f32 VMEM accumulator."""
    k = pl.program_id(2)

    @pl.when(k == 0)
    def _():
        acc_ref[...] = jnp.zeros_like(acc_ref)

    acc_ref[...] += jnp.dot(x_ref[...], w_ref[...],
                            preferred_element_type=jnp.float32)

    @pl.when(k == pl.num_programs(2) - 1)
    def _():
        o_ref[...] = (acc_ref[...] + b_ref[...]).astype(o_ref.dtype)


def _linear_residual_kernel(x_ref, w_ref, b_ref, res_ref, o_ref, acc_ref):
    """o = res + x @ w + b (residual add fused into the finalize step)."""
    k = pl.program_id(2)

    @pl.when(k == 0)
    def _():
        acc_ref[...] = jnp.zeros_like(acc_ref)

    acc_ref[...] += jnp.dot(x_ref[...], w_ref[...],
                            preferred_element_type=jnp.float32)

    @pl.when(k == pl.num_programs(2) - 1)
    def _():
        o_ref[...] = (res_ref[...] + acc_ref[...] + b_ref[...]).astype(o_ref.dtype)


def _ln_linear_kernel(x_ref, g_ref, b_ref, w_ref, bias_ref, o_ref, *, eps, gelu):
    """o = [GELU]( LayerNorm(x) @ w + bias ).  Full feature (K) dim per tile."""
    x = x_ref[...].astype(jnp.float32)
    mu = jnp.mean(x, axis=-1, keepdims=True)
    xc = x - mu
    var = jnp.mean(xc * xc, axis=-1, keepdims=True)
    xn = xc * jax.lax.rsqrt(var + eps) * g_ref[...] + b_ref[...]
    y = jnp.dot(xn, w_ref[...], preferred_element_type=jnp.float32) + bias_ref[...]
    if gelu:
        y = _gelu_tanh(y)
    o_ref[...] = y.astype(o_ref.dtype)


def _attn_kernel(q_ref, k_ref, v_ref, m_ref, o_ref, m_sc, l_sc, acc_sc, *,
                 num_heads, scale):
    """Flash-style masked MHSA for one (batch, q-tile) over kv tiles.

    q:(1,tq,D)  k,v:(1,tk,D)  m:(1,1,tk) float {0,1}  o:(1,tq,D)
    scratch: m_sc,l_sc:(H,tq,1)  acc_sc:(H,tq,Dh)   (all f32)
    """
    kv = pl.program_id(2)
    dh = q_ref.shape[-1] // num_heads

    @pl.when(kv == 0)
    def _():
        m_sc[...] = jnp.full_like(m_sc, -jnp.inf)
        l_sc[...] = jnp.zeros_like(l_sc)
        acc_sc[...] = jnp.zeros_like(acc_sc)

    q_all = q_ref[0].astype(jnp.float32) * scale     # fold softmax scale into q
    k_all = k_ref[0].astype(jnp.float32)
    v_all = v_ref[0].astype(jnp.float32)
    valid = m_ref[0] > 0.5                           # (1, tk) broadcast over rows

    for h in range(num_heads):
        sl = slice(h * dh, (h + 1) * dh)
        q = q_all[:, sl]
        k = k_all[:, sl]
        v = v_all[:, sl]
        s = jax.lax.dot_general(q, k, (((1,), (1,)), ((), ())),
                                preferred_element_type=jnp.float32)   # (tq, tk)
        s = jnp.where(valid, s, jnp.float32(-1e30))
        m_prev = m_sc[h]                                              # (tq, 1)
        m_new = jnp.maximum(m_prev, jnp.max(s, axis=-1, keepdims=True))
        alpha = jnp.exp(m_prev - m_new)
        p = jnp.exp(s - m_new)
        l_sc[h] = alpha * l_sc[h] + jnp.sum(p, axis=-1, keepdims=True)
        acc_sc[h] = alpha * acc_sc[h] + jnp.dot(p, v,
                                                preferred_element_type=jnp.float32)
        m_sc[h] = m_new

    @pl.when(kv == pl.num_programs(2) - 1)
    def _():
        outs = []
        for h in range(num_heads):
            inv_l = pl.reciprocal(l_sc[h], approx=True)
            outs.append(acc_sc[h] * inv_l)
        o_ref[0] = jnp.concatenate(outs, axis=-1).astype(o_ref.dtype)


def _vq_kernel(x_ref, cb_ref, cbn_ref, codes_ref, quant_ref):
    """Nearest-codebook-code lookup (argmin L2) + quantized vectors.

    x:(tn,Dc)  cb:(Ncodes,Dc)  cbn:(1,Ncodes)=0.5*||c||^2
    codes:(tn,1) int32   quant:(tn,Dc) f32
    """
    x = x_ref[...].astype(jnp.float32)
    cb = cb_ref[...].astype(jnp.float32)
    # argmin ||x-c||^2  ==  argmax ( x.c - 0.5*||c||^2 )
    scores = jax.lax.dot_general(x, cb, (((1,), (1,)), ((), ())),
                                 preferred_element_type=jnp.float32)
    scores = scores - cbn_ref[...]
    best = jnp.max(scores, axis=-1, keepdims=True)
    ncodes = scores.shape[-1]
    iota = jax.lax.broadcasted_iota(jnp.int32, scores.shape, 1)
    idx = jnp.min(jnp.where(scores >= best, iota, ncodes), axis=-1, keepdims=True)
    codes_ref[...] = idx
    onehot = (iota == idx).astype(jnp.float32)
    quant_ref[...] = jnp.dot(onehot, cb,
                             preferred_element_type=jnp.float32).astype(quant_ref.dtype)


# ---------------------------------------------------------------------------- #
# Pallas wrappers
# ---------------------------------------------------------------------------- #
def pallas_linear(x, w, b, residual=None, *, tm=256, tn=512, tk=512):
    """y = x @ w + b (+ residual).  Tiled (M, N, K) grid with f32 accumulator."""
    lead = x.shape[:-1]
    K = x.shape[-1]
    N = w.shape[1]
    x2 = x.reshape(-1, K)
    M = x2.shape[0]
    tm_, tn_, tk_ = _tile(M, tm, 8), _tile(N, tn, 128), _tile(K, tk, 128)
    grid = (M // tm_, N // tn_, K // tk_)
    b2 = b.reshape(1, N)

    bytes_acc = 4 * (M * K + K * N + M * N + N)
    if residual is not None:
        bytes_acc += 4 * M * N
    cost = pl.CostEstimate(flops=2 * M * N * K, transcendentals=0,
                           bytes_accessed=bytes_acc)
    cp = pltpu.CompilerParams(
        dimension_semantics=("parallel", "parallel", "arbitrary"),
        vmem_limit_bytes=_VMEM_LIMIT)

    in_specs = [
        pl.BlockSpec((tm_, tk_), lambda i, j, k: (i, k)),
        pl.BlockSpec((tk_, tn_), lambda i, j, k: (k, j)),
        pl.BlockSpec((1, tn_), lambda i, j, k: (0, j)),
    ]
    if residual is None:
        kernel, args = _linear_kernel, (x2, w, b2)
    else:
        kernel = _linear_residual_kernel
        in_specs.append(pl.BlockSpec((tm_, tn_), lambda i, j, k: (i, j)))
        args = (x2, w, b2, residual.reshape(-1, N))

    out = pl.pallas_call(
        kernel,
        out_shape=jax.ShapeDtypeStruct((M, N), jnp.float32),
        grid=grid,
        in_specs=in_specs,
        out_specs=pl.BlockSpec((tm_, tn_), lambda i, j, k: (i, j)),
        scratch_shapes=[pltpu.VMEM((tm_, tn_), jnp.float32)],
        compiler_params=cp,
        cost_estimate=cost,
    )(*args)
    return out.reshape(*lead, N)


def pallas_ln_linear(x, g, beta, w, b, *, activation=None, eps=1e-5, tm=256, tn=512):
    """y = [GELU](LayerNorm(x) @ w + b).  Grid (M, N); full K resident (needed for LN)."""
    lead = x.shape[:-1]
    D = x.shape[-1]
    N = w.shape[1]
    x2 = x.reshape(-1, D)
    M = x2.shape[0]
    tm_, tn_ = _tile(M, tm, 8), _tile(N, tn, 128)
    grid = (M // tm_, N // tn_)

    cost = pl.CostEstimate(
        flops=2 * M * N * D + 10 * M * D,
        transcendentals=(M * N if activation == "gelu" else 0),
        bytes_accessed=4 * (M * D + D * N + M * N + 2 * D + N))
    cp = pltpu.CompilerParams(dimension_semantics=("parallel", "parallel"),
                              vmem_limit_bytes=_VMEM_LIMIT)

    out = pl.pallas_call(
        functools.partial(_ln_linear_kernel, eps=eps, gelu=(activation == "gelu")),
        out_shape=jax.ShapeDtypeStruct((M, N), jnp.float32),
        grid=grid,
        in_specs=[
            pl.BlockSpec((tm_, D), lambda i, j: (i, 0)),
            pl.BlockSpec((1, D), lambda i, j: (0, 0)),
            pl.BlockSpec((1, D), lambda i, j: (0, 0)),
            pl.BlockSpec((D, tn_), lambda i, j: (0, j)),
            pl.BlockSpec((1, tn_), lambda i, j: (0, j)),
        ],
        out_specs=pl.BlockSpec((tm_, tn_), lambda i, j: (i, j)),
        compiler_params=cp,
        cost_estimate=cost,
    )(x2, g.reshape(1, D), beta.reshape(1, D), w, b.reshape(1, N))
    return out.reshape(*lead, N)


def pallas_attention(qkv, mask, num_heads, scale):
    """Flash-style masked MHSA.

    qkv  : (B, T, 3*D) fused projection output (q | k | v along features)
    mask : (B, 1, T) float {0,1}, 1 = real token
    out  : (B, T, D) lane-dense (all heads per grid step)
    """
    B, T, threeD = qkv.shape
    D = threeD // 3
    Dh = D // num_heads
    tq = _tile(T, 256, 8)
    tk = _tile(T, 512, 128)
    grid = (B, T // tq, T // tk)

    kernel = functools.partial(_attn_kernel, num_heads=num_heads, scale=scale)
    mask_spec = pl.BlockSpec((1, 1, tk), lambda b, qi, kv: (b, 0, kv))
    cp = pltpu.CompilerParams(
        dimension_semantics=("parallel", "parallel", "arbitrary"),
        vmem_limit_bytes=_VMEM_LIMIT)
    cost = pl.CostEstimate(flops=4 * B * T * T * D,
                           transcendentals=B * num_heads * T * T,
                           bytes_accessed=4 * (3 * B * T * D + B * T + B * T * D))

    if D % 128 == 0:
        # Read q/k/v straight out of the fused (B, T, 3D) tensor via column-block
        # index maps -- no XLA slicing / head split in HBM.
        in_specs = [
            pl.BlockSpec((1, tq, D), lambda b, qi, kv: (b, qi, 0)),
            pl.BlockSpec((1, tk, D), lambda b, qi, kv: (b, kv, 1)),
            pl.BlockSpec((1, tk, D), lambda b, qi, kv: (b, kv, 2)),
            mask_spec,
        ]
        args = (qkv, qkv, qkv, mask)
    else:
        # Fallback for feature dims not lane-aligned: slice once in XLA.
        q, k, v = qkv[..., :D], qkv[..., D:2 * D], qkv[..., 2 * D:]
        in_specs = [
            pl.BlockSpec((1, tq, D), lambda b, qi, kv: (b, qi, 0)),
            pl.BlockSpec((1, tk, D), lambda b, qi, kv: (b, kv, 0)),
            pl.BlockSpec((1, tk, D), lambda b, qi, kv: (b, kv, 0)),
            mask_spec,
        ]
        args = (q, k, v, mask)

    return pl.pallas_call(
        kernel,
        out_shape=jax.ShapeDtypeStruct((B, T, D), jnp.float32),
        grid=grid,
        in_specs=in_specs,
        out_specs=pl.BlockSpec((1, tq, D), lambda b, qi, kv: (b, qi, 0)),
        scratch_shapes=[
            pltpu.VMEM((num_heads, tq, 1), jnp.float32),
            pltpu.VMEM((num_heads, tq, 1), jnp.float32),
            pltpu.VMEM((num_heads, tq, Dh), jnp.float32),
        ],
        compiler_params=cp,
        cost_estimate=cost,
    )(*args)


def pallas_vq_nearest(x, codebook):
    """Nearest codebook code per row.  x:(Nv,Dc), codebook:(Ncodes,Dc)."""
    Nv, Dc = x.shape
    Ncodes = codebook.shape[0]
    half_norm = (0.5 * jnp.sum(codebook.astype(jnp.float32) ** 2,
                               axis=-1)).reshape(1, Ncodes)
    tnv = _tile(Nv, 512, 8)
    grid = (Nv // tnv,)
    cp = pltpu.CompilerParams(dimension_semantics=("parallel",),
                              vmem_limit_bytes=_VMEM_LIMIT)
    codes, quant = pl.pallas_call(
        _vq_kernel,
        out_shape=(jax.ShapeDtypeStruct((Nv, 1), jnp.int32),
                   jax.ShapeDtypeStruct((Nv, Dc), jnp.float32)),
        grid=grid,
        in_specs=[
            pl.BlockSpec((tnv, Dc), lambda i: (i, 0)),
            pl.BlockSpec((Ncodes, Dc), lambda i: (0, 0)),
            pl.BlockSpec((1, Ncodes), lambda i: (0, 0)),
        ],
        out_specs=(pl.BlockSpec((tnv, 1), lambda i: (i, 0)),
                   pl.BlockSpec((tnv, Dc), lambda i: (i, 0))),
        compiler_params=cp,
    )(x, codebook, half_norm)
    return codes[:, 0], quant


# ---------------------------------------------------------------------------- #
# Model forward (gather / scatter glue in plain JAX; compute in Pallas)
# ---------------------------------------------------------------------------- #
def _encoder_layers(x, mask, layers, num_heads):
    """Pre-norm transformer layers (final LN is fused with proj_vertex by caller)."""
    B, T, D = x.shape
    scale = 1.0 / math.sqrt(D // num_heads)
    mask3 = mask.reshape(B, 1, T)

    for lp in layers:
        # --- self-attention block: fused LN + QKV, flash attention, fused out-proj+residual
        qkv = pallas_ln_linear(x, lp["ln1_g"], lp["ln1_b"], lp["w_qkv"], lp["b_qkv"])
        attn = pallas_attention(qkv, mask3, num_heads, scale)
        x = pallas_linear(attn, lp["wo"], lp["bo"], residual=x)

        # --- feed-forward block: fused LN + FF1 + GELU, fused FF2 + residual
        h = pallas_ln_linear(x, lp["ln2_g"], lp["ln2_b"], lp["w_ff1"], lp["b_ff1"],
                             activation="gelu")
        x = pallas_linear(h, lp["w_ff2"], lp["b_ff2"], residual=x)
    return x


def residual_vq(x, codebook, num_quantizers, valid_mask, commitment_weight):
    """Shared-codebook ResidualVQ forward (deterministic nearest-code lookup).

    Returns (quantized (Nv,Dc), codes (Nv,nq) int32, commit_loss scalar).
    NOTE: EMA codebook update / rotation-trick affect training gradients only;
    the forward quantized value equals the selected codes, as implemented here.
    """
    Dc = x.shape[-1]
    n_valid = jnp.maximum(jnp.sum(valid_mask), 1.0)
    denom = n_valid * Dc

    residual = x
    quant_out = jnp.zeros_like(x)
    codes = []
    loss = jnp.float32(0.0)
    for _ in range(num_quantizers):
        idx, q = pallas_vq_nearest(residual, codebook)
        diff = (q - residual) * valid_mask[:, None]
        loss = loss + jnp.sum(diff * diff) / denom      # masked F.mse_loss
        quant_out = quant_out + q
        residual = residual - q
        codes.append(idx)
    codes = jnp.stack(codes, axis=-1)                   # (Nv, nq)
    return quant_out, codes, commitment_weight * loss


def mesh_ae_encoder_forward(faces, face_embeds, face_masks, params, config):
    """MeshAEEncoder.forward.

    faces       : (B, n_face, 3) int32 vertex ids
    face_embeds : (B, n_face, D) float32
    face_masks  : (B, n_face) bool
    returns     : face_embeds (B,n_face,D), face_codes (B,n_face,3*nq), commit_loss ()
    """
    B, T, D = face_embeds.shape
    Dc = config["codebook_size"]
    nq = config["num_quantizers"]
    Vmax = config["max_vertices"]       # TODO(synk): dynamic vertex counts are padded
    mask_f = face_masks.astype(jnp.float32)

    # 1. transformer encoder (final LN fused into proj_vertex below)
    x = _encoder_layers(face_embeds, mask_f, params["encoder"]["layers"],
                        config["num_encoder_heads"])

    # 2. final LayerNorm + proj_vertex, fused:  (B, T, 3*Dc)
    fv = pallas_ln_linear(x, params["encoder"]["final_g"], params["encoder"]["final_b"],
                          params["proj_vertex"]["w"], params["proj_vertex"]["b"])
    vert_src = fv.reshape(B, T, 3, Dc)              # 'b t (v e) -> b t v e'

    # 3. face -> vertex scatter-mean pooling (shared vertices averaged).
    #    Data-dependent scatter/gather has no rectangular Pallas tiling; done in JAX.
    flat_idx = faces + (jnp.arange(B, dtype=faces.dtype) * Vmax)[:, None, None]
    weights = jnp.broadcast_to(mask_f[:, :, None], (B, T, 3))
    seg_ids = flat_idx.reshape(-1)
    seg_sum = jax.ops.segment_sum(
        (vert_src * weights[..., None]).reshape(-1, Dc), seg_ids, num_segments=B * Vmax)
    seg_cnt = jax.ops.segment_sum(weights.reshape(-1), seg_ids, num_segments=B * Vmax)
    vrtx_embeds = seg_sum / jnp.maximum(seg_cnt, 1.0)[:, None]

    vrtx_counts = jnp.max(faces, axis=(1, 2)) + 1                     # (B,)
    vert_valid = (jnp.arange(Vmax)[None, :] < vrtx_counts[:, None])
    vert_valid = vert_valid.astype(jnp.float32).reshape(-1)           # (B*Vmax,)

    # 4. residual vector quantization (shared codebook)
    vrtx_quant, vrtx_codes, commit_loss = residual_vq(
        vrtx_embeds, params["codebook"], nq, vert_valid, config["commitment_weight"])

    # 5. gather quantized vertex latents back per face and project to hidden size
    face_lat = vrtx_quant[flat_idx].reshape(B, T, 3 * Dc) * mask_f[..., None]
    face_out = pallas_linear(face_lat, params["proj_latent"]["w"],
                             params["proj_latent"]["b"])
    face_codes = vrtx_codes[flat_idx].reshape(B, T, 3 * nq)
    face_codes = face_codes * face_masks[..., None].astype(jnp.int32)

    return face_out, face_codes, commit_loss


# ---------------------------------------------------------------------------- #
# Deterministic synthetic parameters
# ---------------------------------------------------------------------------- #
def _w(key, shape, scale=0.02):
    return jax.random.normal(key, shape, jnp.float32) * scale


def _init_layer(key, d):
    ks = jax.random.split(key, 4)
    return dict(
        ln1_g=jnp.ones((d,), jnp.float32), ln1_b=jnp.zeros((d,), jnp.float32),
        w_qkv=_w(ks[0], (d, 3 * d)), b_qkv=jnp.zeros((3 * d,), jnp.float32),
        wo=_w(ks[1], (d, d)), bo=jnp.zeros((d,), jnp.float32),
        ln2_g=jnp.ones((d,), jnp.float32), ln2_b=jnp.zeros((d,), jnp.float32),
        w_ff1=_w(ks[2], (d, 4 * d)), b_ff1=jnp.zeros((4 * d,), jnp.float32),
        w_ff2=_w(ks[3], (4 * d, d)), b_ff2=jnp.zeros((d,), jnp.float32),
    )


def init_params(key, *, hidden_size, num_encoder_layers, codebook_size,
                num_codebook_codes):
    k_enc, k_pv, k_pl, k_cb = jax.random.split(key, 4)
    d = hidden_size
    layer_keys = jax.random.split(k_enc, num_encoder_layers)
    return dict(
        encoder=dict(
            layers=[_init_layer(k, d) for k in layer_keys],
            final_g=jnp.ones((d,), jnp.float32),
            final_b=jnp.zeros((d,), jnp.float32),
        ),
        proj_vertex=dict(w=_w(k_pv, (d, 3 * codebook_size)),
                         b=jnp.zeros((3 * codebook_size,), jnp.float32)),
        proj_latent=dict(w=_w(k_pl, (3 * codebook_size, d)),
                         b=jnp.zeros((d,), jnp.float32)),
        codebook=_w(k_cb, (num_codebook_codes, codebook_size), scale=0.5),
    )


# ---------------------------------------------------------------------------- #
# Main
# ---------------------------------------------------------------------------- #
if __name__ == "__main__":
    B, T = 2, 8                      # batch, n_face
    config = dict(
        hidden_size=128,             # lane-aligned small hidden dim (default is 512)
        num_encoder_layers=2,
        num_encoder_heads=4,
        codebook_size=32,
        num_quantizers=2,
        num_codebook_codes=64,
        commitment_weight=1.0,
        max_vertices=8,              # static vertex-count bound (padding)
    )

    key = jax.random.PRNGKey(0)
    k_in, k_p = jax.random.split(key)
    face_embeds = jax.random.normal(k_in, (B, T, config["hidden_size"]), jnp.float32)
    # triangle-strip-like faces so consecutive faces share vertices
    faces = ((jnp.arange(T)[None, :, None] + jnp.arange(3)[None, None, :]
              + jnp.arange(B)[:, None, None]) % config["max_vertices"]).astype(jnp.int32)
    face_masks = jnp.array([[1, 1, 1, 1, 1, 1, 0, 0],
                            [1, 1, 1, 1, 1, 1, 1, 1]], dtype=jnp.bool_)

    params = init_params(
        k_p,
        hidden_size=config["hidden_size"],
        num_encoder_layers=config["num_encoder_layers"],
        codebook_size=config["codebook_size"],
        num_codebook_codes=config["num_codebook_codes"],
    )

    out_embeds, out_codes, commit_loss = jax.block_until_ready(
        mesh_ae_encoder_forward(faces, face_embeds, face_masks, params, config))

    assert out_embeds.shape == (B, T, config["hidden_size"]), out_embeds.shape
    assert out_codes.shape == (B, T, 3 * config["num_quantizers"]), out_codes.shape
    assert commit_loss.shape == ()
    assert bool(jnp.all(jnp.isfinite(out_embeds)))
    assert bool(jnp.isfinite(commit_loss))
    assert bool(jnp.all((out_codes >= 0) & (out_codes < config["num_codebook_codes"])))
    print("KERNEL_OK")
</pallas_src>

<mosaic_0001>
module attributes {stable_mosaic.version = 11 : i64} {
  func.func @_ln_linear_kernel(%arg0: i32, %arg1: i32, %arg2: memref<16x128xf32, #tpu.memory_space<vmem>>, %arg3: memref<1x128xf32, #tpu.memory_space<vmem>>, %arg4: memref<1x128xf32, #tpu.memory_space<vmem>>, %arg5: memref<128x384xf32, #tpu.memory_space<vmem>>, %arg6: memref<1x384xf32, #tpu.memory_space<vmem>>, %arg7: memref<16x384xf32, #tpu.memory_space<vmem>>) attributes {dimension_semantics = [#tpu.dimension_semantics<parallel>, #tpu.dimension_semantics<parallel>], iteration_bounds = array<i64: 1, 1>, scalar_prefetch = 0 : i64, scratch_operands = 0 : i64, tpu.core_type = #tpu.core_type<tc>, window_params = [{transform_indices = @transform_0, window_bounds = array<i64: 16, 128>}, {pipeline_mode = #tpu.pipeline_mode<synchronous>, transform_indices = @transform_1, window_bounds = array<i64: 1, 128>}, {pipeline_mode = #tpu.pipeline_mode<synchronous>, transform_indices = @transform_2, window_bounds = array<i64: 1, 128>}, {transform_indices = @transform_3, window_bounds = array<i64: 128, 384>}, {transform_indices = @transform_4, window_bounds = array<i64: 1, 384>}, {transform_indices = @transform_5, window_bounds = array<i64: 16, 384>}]} {
    %c0 = arith.constant 0 : index
    %c0_0 = arith.constant 0 : index
    %0 = vector.load %arg2[%c0, %c0_0] : memref<16x128xf32, #tpu.memory_space<vmem>>, vector<16x128xf32>
    %cst = arith.constant dense<0.000000e+00> : vector<16xf32>
    %1 = vector.multi_reduction <add>, %0, %cst [1] : vector<16x128xf32> to vector<16xf32>
    %2 = vector.shape_cast %1 : vector<16xf32> to vector<16x1xf32>
    %cst_1 = arith.constant 1.280000e+02 : f32
    %3 = vector.broadcast %cst_1 : f32 to vector<16x1xf32>
    %4 = arith.divf %2, %3 : vector<16x1xf32>
    %5 = vector.broadcast %4 : vector<16x1xf32> to vector<16x128xf32>
    %6 = arith.subf %0, %5 : vector<16x128xf32>
    %7 = arith.mulf %6, %6 : vector<16x128xf32>
    %cst_2 = arith.constant dense<0.000000e+00> : vector<16xf32>
    %8 = vector.multi_reduction <add>, %7, %cst_2 [1] : vector<16x128xf32> to vector<16xf32>
    %9 = vector.shape_cast %8 : vector<16xf32> to vector<16x1xf32>
    %cst_3 = arith.constant 1.280000e+02 : f32
    %10 = vector.broadcast %cst_3 : f32 to vector<16x1xf32>
    %11 = arith.divf %9, %10 : vector<16x1xf32>
    %cst_4 = arith.constant 9.99999974E-6 : f32
    %12 = vector.broadcast %cst_4 : f32 to vector<16x1xf32>
    %13 = arith.addf %11, %12 : vector<16x1xf32>
    %14 = math.rsqrt %13 : vector<16x1xf32>
    %15 = vector.broadcast %14 : vector<16x1xf32> to vector<16x128xf32>
    %16 = arith.mulf %6, %15 : vector<16x128xf32>
    %c0_5 = arith.constant 0 : index
    %c0_6 = arith.constant 0 : index
    %17 = vector.load %arg3[%c0_5, %c0_6] : memref<1x128xf32, #tpu.memory_space<vmem>>, vector<1x128xf32>
    %18 = vector.broadcast %17 : vector<1x128xf32> to vector<16x128xf32>
    %19 = arith.mulf %16, %18 : vector<16x128xf32>
    %c0_7 = arith.constant 0 : index
    %c0_8 = arith.constant 0 : index
    %20 = vector.load %arg4[%c0_7, %c0_8] : memref<1x128xf32, #tpu.memory_space<vmem>>, vector<1x128xf32>
    %21 = vector.broadcast %20 : vector<1x128xf32> to vector<16x128xf32>
    %22 = arith.addf %19, %21 : vector<16x128xf32>
    %c0_9 = arith.constant 0 : index
    %c0_10 = arith.constant 0 : index
    %23 = vector.load %arg5[%c0_9, %c0_10] : memref<128x384xf32, #tpu.memory_space<vmem>>, vector<128x384xf32>
    %cst_11 = arith.constant dense<0.000000e+00> : vector<16x384xf32>
    %24 = tpu.matmul %22, %23, %cst_11 {dimension_numbers = #tpu.dot_dimension_numbers<[1], [0], [0], [1], [0, 0, 1, 1], [], []>} : vector<16x128xf32>, vector<128x384xf32>, vector<16x384xf32> -> vector<16x384xf32>
    %c0_12 = arith.constant 0 : index
    %c0_13 = arith.constant 0 : index
    %25 = vector.load %arg6[%c0_12, %c0_13] : memref<1x384xf32, #tpu.memory_space<vmem>>, vector<1x384xf32>
    %26 = vector.broadcast %25 : vector<1x384xf32> to vector<16x384xf32>
    %27 = arith.addf %24, %26 : vector<16x384xf32>
    %c0_14 = arith.constant 0 : index
    %c0_15 = arith.constant 0 : index
    %28 = vector.load %arg7[%c0_14, %c0_15] : memref<16x384xf32, #tpu.memory_space<vmem>>, vector<16x384xf32>
    tpu.vector_store %arg7[%c0_14, %c0_15], %27 {strides = array<i32>} : memref<16x384xf32, #tpu.memory_space<vmem>>, vector<16x384xf32>,
    return
  }
  func.func @transform_0(%arg0: i32, %arg1: i32) -> (i32, i32) {
    %c0_i32 = arith.constant 0 : i32
    %c0_i32_0 = arith.constant 0 : i32
    return %arg0, %c0_i32 : i32, i32
  }
  func.func @transform_1(%arg0: i32, %arg1: i32) -> (i32, i32) {
    %c0_i32 = arith.constant 0 : i32
    %c0_i32_0 = arith.constant 0 : i32
    %c0_i32_1 = arith.constant 0 : i32
    return %c0_i32, %c0_i32_0 : i32, i32
  }
  func.func @transform_2(%arg0: i32, %arg1: i32) -> (i32, i32) {
    %c0_i32 = arith.constant 0 : i32
    %c0_i32_0 = arith.constant 0 : i32
    %c0_i32_1 = arith.constant 0 : i32
    return %c0_i32, %c0_i32_0 : i32, i32
  }
  func.func @transform_3(%arg0: i32, %arg1: i32) -> (i32, i32) {
    %c0_i32 = arith.constant 0 : i32
    %c0_i32_0 = arith.constant 0 : i32
    return %c0_i32, %arg1 : i32, i32
  }
  func.func @transform_4(%arg0: i32, %arg1: i32) -> (i32, i32) {
    %c0_i32 = arith.constant 0 : i32
    %c0_i32_0 = arith.constant 0 : i32
    return %c0_i32, %arg1 : i32, i32
  }
  func.func @transform_5(%arg0: i32, %arg1: i32) -> (i32, i32) {
    %c0_i32 = arith.constant 0 : i32
    return %arg0, %arg1 : i32, i32
  }
}

</mosaic_0001>

<bundles_post_ra>
// kernel: tpu_custom_call.1
= control target key start
LH: loop header
LB: loop body
LE: loop exit
PB: predicated region body
PF: predicated region fallthrough
CT: control target
= control target key end

     0   :  { %10 = vsyncpa [#allocation3], 0  ;;  %s635_s0 = inlined_call_operand.hbm [shape: f32[16,128], index: 0, kind: input, shape index: {}]   ;;  %s636_s1 = inlined_call_operand.vmem [shape: f32[1,128], index: 1, kind: input, shape index: {}]   ;;  %s637_s2 = inlined_call_operand.vmem [shape: f32[1,128], index: 2, kind: input, shape index: {}]   ;;  %s638_s3 = inlined_call_operand.hbm [shape: f32[128,384], index: 3, kind: input, shape index: {}]   ;;  %s639_s4 = inlined_call_operand.vmem [shape: f32[1,384], index: 4, kind: input, shape index: {}]   ;;  %s640_s5 = inlined_call_operand.hbm [shape: f32[16,384], index: 5, kind: output, shape index: {}]  }
   0x1   :  { %11 = vsyncpa [#allocation6], 0 }
   0x2   :  { %12 = vsyncpa [#allocation4], 0  ;;  %s536_s18 = smov [#allocation2]   ;;  %s464_s22 = scalar_lea.hbm %s635_s0, 256 }
   0x3   :  { %s18_s19 = sshll.u32 %s536_s18, 4  ;;  %p465_p0 = scmp.ne.s32.totalorder %s635_s0, %s464_s22  ;;  %s19_s19 = int_to_ptr.vmem [resolvable:$true] %s18_s19 }
   0x4   :  { %p468_p1 = scmp.lt.u32.totalorder %s464_s22, %s635_s0 }
   0x6   :  { %p470_p2 = pnand %p468_p1, %p465_p0 }
   0x8   :  { %473 = shalt.err (!%p470_p2)
}
   0x9   :  { %s474_s27 = scalar_lea.vmem %s19_s19, 256  ;;  %p479_p4 = scmp.lt.s32.totalorder %s19_s19, %s19_s19 }
   0xa   :  { %p475_p3 = scmp.ne.s32.totalorder %s19_s19, %s474_s27  ;;  %p480_p5 = scmp.lt.s32.totalorder %s474_s27, %s474_s27 }
   0xc   :  { %p481_p6 = por %p480_p5, %p479_p4 }
   0xe   :  { %p482_p7 = pnand %p481_p6, %p475_p3 }
  0x10   :  { %485 = shalt.err (!%p482_p7)
}
  0x11   :  { %s537_s28 = smov 128   ;;  %s538_s29 = smov 8  }
  0x12   :  { %24 = dma.hbm_to_vmem [thread:$0]  %s635_s0, 256, %s19_s19, [#allocation3], %s537_s28, %s537_s28, %s538_s29  }
  0x13   :  { %s539_s7 = smov [#allocation5]   ;;  %s486_s11 = scalar_lea.hbm %s638_s3, 6144 }
  0x14   :  { %s34_s8 = sshll.u32 %s539_s7, 4  ;;  %p487_p8 = scmp.ne.s32.totalorder %s638_s3, %s486_s11  ;;  %s35_s8 = int_to_ptr.vmem [resolvable:$true] %s34_s8 }
  0x15   :  { %p490_p9 = scmp.lt.u32.totalorder %s486_s11, %s638_s3 }
  0x17   :  { %p492_p10 = pnand %p490_p9, %p487_p8 }
  0x19   :  { %495 = shalt.err (!%p492_p10)
}
  0x1a   :  { %s496_s16 = scalar_lea.vmem %s35_s8, 6144  ;;  %p501_p12 = scmp.lt.s32.totalorder %s35_s8, %s35_s8 }
  0x1b   :  { %p497_p11 = scmp.ne.s32.totalorder %s35_s8, %s496_s16  ;;  %p502_p13 = scmp.lt.s32.totalorder %s496_s16, %s496_s16 }
  0x1d   :  { %p503_p0 = por %p502_p13, %p501_p12 }
  0x1f   :  { %p504_p1 = pnand %p503_p0, %p497_p11 }
  0x21   :  { %507 = shalt.err (!%p504_p1)
}
  0x22   :  { %s540_s0 = smov 384   ;;  %s541_s17 = smov 24  }
  0x23   :  { %40 = dma.hbm_to_vmem [thread:$0]  %s638_s3, 6144, %s35_s8, [#allocation6], %s540_s0, %s540_s0, %s541_s17  }
  0x24   :  { %530 = dma.done.wait [#allocation3], 256  }
  0x25   :  { %531 = vsyncadd [#allocation3], 4294967040 }
  0x26   :  { %532 = dma.done.wait [#allocation6], 6144  }
  0x27   :  { %533 = vsyncadd [#allocation6], 4294961152  ;;  %v49_v0 = vld [vmem:[#allocation2] sm:$0xff]  ;;  %v50_v1 = vld [vmem:[#allocation2 + $0x8] sm:$0xff] }
  0x28   :  { %51 = vadd.xlane.f32.xlu0 %v49_v0  ;;  %v93_v2 = vld [vmem:[#allocation5 + $0x8] sm:$0xff]  ;;  %v96_v3 = vld [vmem:[#allocation5 + $0x20] sm:$0xff]  ;;  %v95_v6 = vld [vmem:[#allocation5 + $0x18] sm:$0xff] }
  0x29   :  { %v92_v4 = vld [vmem:[#allocation5] sm:$0xff]  ;;  %v388_v5 = vpack.c.bf16 %v96_v3, %v93_v2  ;;  %v99_v7 = vld [vmem:[#allocation5 + $0x38] sm:$0xff]  ;;  %v102_v8 = vld [vmem:[#allocation5 + $0x50] sm:$0xff] }
  0x2a   :  { %v390_v9 = vpack.c.bf16 %v95_v6, %v92_v4  ;;  %v392_v10 = vpack.c.bf16 %v102_v8, %v99_v7  ;;  %v94_v11 = vld [vmem:[#allocation5 + $0x10] sm:$0xff]  ;;  %v97_v12 = vld [vmem:[#allocation5 + $0x28] sm:$0xff]  ;;  %v108_v17 = vld [vmem:[#allocation5 + $0x80] sm:$0xff]  ;;  %v542_v4 = vmov 0.0  }
  0x2b   :  { %v98_v13 = vld [vmem:[#allocation5 + $0x30] sm:$0xff]  ;;  %389 = vmatprep.subr.bf16.mxu0 %v388_v5  ;;  %v420_v14 = vpack.c.bf16 %v97_v12, %v94_v11  ;;  %v101_v15 = vld [vmem:[#allocation5 + $0x48] sm:$0xff]  ;;  %v100_v19 = vld [vmem:[#allocation5 + $0x40] sm:$0xff]  ;;  %221 = vmatprep.mubr.f32.mxu0 %v542_v4 }
  0x2c   :  { %53 = vadd.xlane.f32.xlu0 %v50_v1  ;;  %v105_v16 = vld [vmem:[#allocation5 + $0x68] sm:$0xff]  ;;  %391 = vmatpush1.bf16.msra.mxu0 %v390_v9  ;;  %v394_v18 = vpack.c.bf16 %v101_v15, %v98_v13  ;;  %v103_v20 = vld [vmem:[#allocation5 + $0x58] sm:$0xff]  ;;  %v104_v23 = vld [vmem:[#allocation5 + $0x60] sm:$0xff] }
  0x2d   :  { %393 = vmatprep.subr.bf16.mxu0 %v392_v10  ;;  %421 = vmatprep.subr.bf16.mxu1 %v420_v14  ;;  %v396_v21 = vpack.c.bf16 %v108_v17, %v105_v16  ;;  %v424_v22 = vpack.c.bf16 %v103_v20, %v100_v19  ;;  %v107_v24 = vld [vmem:[#allocation5 + $0x78] sm:$0xff]  ;;  %v114_v35 = vld [vmem:[#allocation5 + $0xb0] sm:$0xff]  ;;  %v109_v38 = vld [vmem:[#allocation5 + $0x88] sm:$0xff] }
  0x2e   :  { %423 = vmatpush3.bf16.msra.mxu1 %v420_v14  ;;  %v398_v25 = vpack.c.bf16 %v107_v24, %v104_v23  ;;  %v111_v34 = vld [vmem:[#allocation5 + $0x98] sm:$0xff]  ;;  %v106_v36 = vld [vmem:[#allocation5 + $0x70] sm:$0xff]  ;;  %v113_v40 = vld [vmem:[#allocation5 + $0xa8] sm:$0xff] }
  0x2f   :  { %425 = vmatprep.subr.bf16.mxu1 %v424_v22  ;;  %v400_v37 = vpack.c.bf16 %v114_v35, %v111_v34  ;;  %v110_v39 = vld [vmem:[#allocation5 + $0x90] sm:$0xff]  ;;  %v428_v41 = vpack.c.bf16 %v109_v38, %v106_v36  ;;  %v117_v43 = vld [vmem:[#allocation5 + $0xc8] sm:$0xff]  ;;  %v120_v44 = vld [vmem:[#allocation5 + $0xe0] sm:$0xff] }
  0x30   :  { %395 = vmatpush1.bf16.msra.mxu0 %v394_v18  ;;  %v402_v42 = vpack.c.bf16 %v113_v40, %v110_v39  ;;  %v112_v45 = vld [vmem:[#allocation5 + $0xa0] sm:$0xff]  ;;  %v404_v46 = vpack.c.bf16 %v120_v44, %v117_v43  ;;  %v115_v47 = vld [vmem:[#allocation5 + $0xb8] sm:$0xff]  ;;  %v126_v53 = vld [vmem:[#allocation5 + $0x110] sm:$0xff] }
  0x31   :  { %397 = vmatprep.subr.bf16.mxu0 %v396_v21  ;;  %v116_v48 = vld [vmem:[#allocation5 + $0xc0] sm:$0xff]  ;;  %v119_v49 = vld [vmem:[#allocation5 + $0xd8] sm:$0xff]  ;;  %v432_v50 = vpack.c.bf16 %v115_v47, %v112_v45  ;;  %v118_v54 = vld [vmem:[#allocation5 + $0xd0] sm:$0xff] }
  0x32   :  { %427 = vmatpush3.bf16.msra.mxu1 %v424_v22  ;;  %v406_v51 = vpack.c.bf16 %v119_v49, %v116_v48  ;;  %v123_v52 = vld [vmem:[#allocation5 + $0xf8] sm:$0xff]  ;;  %v121_v56 = vld [vmem:[#allocation5 + $0xe8] sm:$0xff]  ;;  %v122_v57 = vld [vmem:[#allocation5 + $0xf0] sm:$0xff] }
  0x33   :  { %429 = vmatprep.subr.bf16.mxu1 %v428_v41  ;;  %v408_v55 = vpack.c.bf16 %v126_v53, %v123_v52  ;;  %v125_v58 = vld [vmem:[#allocation5 + $0x108] sm:$0xff]  ;;  %v436_v59 = vpack.c.bf16 %v121_v56, %v118_v54  ;;  %v132_v62 = vld [vmem:[#allocation5 + $0x140] sm:$0xff]  ;;  %v131_v3 = vld [vmem:[#allocation5 + $0x138] sm:$0xff] }
  0x34   :  { %399 = vmatpush1.bf16.msra.mxu0 %v398_v25  ;;  %v410_v60 = vpack.c.bf16 %v125_v58, %v122_v57  ;;  %v129_v61 = vld [vmem:[#allocation5 + $0x128] sm:$0xff]  ;;  %v124_v63 = vld [vmem:[#allocation5 + $0x100] sm:$0xff]  ;;  %v135_v7 = vld [vmem:[#allocation5 + $0x158] sm:$0xff] }
  0x35   :  { %401 = vmatprep.subr.bf16.mxu0 %v400_v37  ;;  %v128_v2 = vld [vmem:[#allocation5 + $0x120] sm:$0xff]  ;;  %v138_v8 = vld [vmem:[#allocation5 + $0x170] sm:$0xff]  ;;  %v133_v11 = vld [vmem:[#allocation5 + $0x148] sm:$0xff]  ;;  %v142_v37 = vlaneseq }
  0x36   :  { %431 = vmatpush3.bf16.msra.mxu1 %v428_v41  ;;  %v414_v6 = vpack.c.bf16 %v131_v3, %v128_v2  ;;  %v130_v9 = vld [vmem:[#allocation5 + $0x130] sm:$0xff]  ;;  %v416_v10 = vpack.c.bf16 %v138_v8, %v135_v7  ;;  %v137_v13 = vld [vmem:[#allocation5 + $0x168] sm:$0xff]  ;;  %v136_v16 = vld [vmem:[#allocation5 + $0x160] sm:$0xff] }
  0x37   :  { %433 = vmatprep.subr.bf16.mxu1 %v432_v50  ;;  %v134_v12 = vld [vmem:[#allocation5 + $0x150] sm:$0xff]  ;;  %v444_v14 = vpack.c.bf16 %v133_v11, %v130_v9  ;;  %v139_v17 = vld [vmem:[#allocation5 + $0x178] sm:$0xff]  ;;  %v143_v38 = vshrl.u32 %v142_v37, 7 }
  0x38   :  { %403 = vmatpush1.bf16.msra.mxu0 %v402_v42  ;;  %v418_v15 = vpack.c.bf16 %v137_v13, %v134_v12  ;;  %v448_v18 = vpack.c.bf16 %v139_v17, %v136_v16 }
  0x39   :  { %405 = vmatprep.subr.bf16.mxu0 %v404_v46  ;;  %v144_v39 = vsub.s32 0, %v143_v38  ;;  %v148_v40 = vsub.s32 1, %v143_v38  ;;  %v152_v42 = vsub.s32 2, %v143_v38 }
  0x3a   :  { %435 = vmatpush3.bf16.msra.mxu1 %v432_v50 }
  0x3b   :  { %437 = vmatprep.subr.bf16.mxu1 %v436_v59 }
  0x3c   :  { %407 = vmatpush1.bf16.msra.mxu0 %v406_v51 }
  0x3d   :  { %409 = vmatprep.subr.bf16.mxu0 %v408_v55 }
  0x3e   :  { %439 = vmatpush3.bf16.msra.mxu1 %v436_v59 }
  0x40   :  { %411 = vmatpush1.bf16.msra.mxu0 %v410_v60 }
  0xb5   :  { %v52_v26 = vpop.xlane.xlu0 %51 }
  0xb6   :  { %v56_v27 = vmul.f32 0.0078125, %v52_v26  ;;  %v333_v26 = vld [vmem:[%s636_s1] ss:$0 sm:$0xff] }
  0xb8   :  { %v601_v28 = vsub.f32 %v49_v0, %v56_v27  ;;  %v412_v0 = vpack.c.bf16 %v132_v62, %v129_v61 }
  0xb9   :  { %v54_v29 = vpop.xlane.xlu0 %53 }
  0xba   :  { %v57_v30 = vmul.f32 0.0078125, %v54_v29  ;;  %v60_v31 = vmul.f32 %v601_v28, %v601_v28  ;;  %413 = vmatprep.subr.bf16.mxu0 %v412_v0  ;;  %v334_v29 = vld [vmem:[%s637_s2] ss:$0 sm:$0xff]  ;;  %s543_s2 = smov [#allocation7]  }
  0xbb   :  { %415 = vmatpush1.bf16.msra.mxu0 %v414_v6  ;;  %s320_s24 = sshll.u32 %s543_s2, 4  ;;  %s321_s24 = int_to_ptr.vmem [resolvable:$true] %s320_s24 }
  0xbc   :  { %v605_v32 = vsub.f32 %v50_v1, %v57_v30  ;;  %62 = vadd.xlane.f32.xlu1 %v60_v31  ;;  %v127_v1 = vld [vmem:[#allocation5 + $0x118] sm:$0xff]  ;;  %417 = vmatprep.subr.bf16.mxu0 %v416_v10  ;;  %p513_p3 = scmp.lt.s32.totalorder %s321_s24, %s321_s24 }
  0xbd   :  { %v440_v5 = vpack.c.bf16 %v127_v1, %v124_v63 }
  0xbe   :  { %v61_v33 = vmul.f32 %v605_v32, %v605_v32 }
  0xbf   :  { %441 = vmatprep.subr.bf16.mxu1 %v440_v5  ;;  %419 = vmatpush1.bf16.msra.mxu0 %v418_v15 }
  0xc0   :  { %64 = vadd.xlane.f32.xlu1 %v61_v33  ;;  %443 = vmatpush3.bf16.msra.mxu1 %v440_v5 }
  0xc1   :  { %445 = vmatprep.subr.bf16.mxu1 %v444_v14 }
  0xc4   :  { %447 = vmatpush3.bf16.msra.mxu1 %v444_v14 }
  0xc5   :  { %449 = vmatprep.subr.bf16.mxu1 %v448_v18 }
  0xc8   :  { %451 = vmatpush3.bf16.msra.mxu1 %v448_v18 }
 0x149   :  { %v63_v19 = vpop.xlane.xlu1 %62 }
 0x14a   :  { %v66_v20 = vmul.f32 0.0078125, %v63_v19 }
 0x14c   :  { %v68_v21 = vadd.f32 1e-05, %v66_v20 }
 0x14d   :  { %v65_v22 = vpop.xlane.xlu1 %64 }
 0x14e   :  { %460 = vrsqrt.f32 %v68_v21  ;;  %v67_v23 = vmul.f32 0.0078125, %v65_v22 }
 0x150   :  { %v69_v24 = vadd.f32 1e-05, %v67_v23 }
 0x152   :  { %462 = vrsqrt.f32 %v69_v24 }
 0x158   :  { %v461_v25 = vpop.eup %460 }
 0x159   :  { %v72_v27 = vmul.f32 %v461_v25, %v601_v28  ;;  %v140_v28 = vld [vmem:[%s639_s4] sm:$0x7]  ;;  %s508_s4 = scalar_lea.vmem %s321_s24, 768 }
 0x15a   :  { %v145_v41 = vrot.slane %v140_v28, %v144_v39  ;;  %v149_v43 = vrot.slane %v140_v28, %v148_v40  ;;  %v153_v46 = vrot.slane %v140_v28, %v152_v42  ;;  %p509_p2 = scmp.ne.s32.totalorder %s321_s24, %s508_s4  ;;  %p514_p4 = scmp.lt.s32.totalorder %s508_s4, %s508_s4 }
 0x15b   :  { %v81_v30 = vmul.f32 %v333_v26, %v72_v27 }
 0x15c   :  { %v463_v31 = vpop.eup %462  ;;  %p515_p5 = por %p514_p4, %p513_p3 }
 0x15d   :  { %v90_v33 = vadd.f32 %v334_v29, %v81_v30  ;;  %v73_v34 = vmul.f32 %v463_v31, %v605_v32 }
 0x15e   :  { %p516_p6 = pnand %p515_p5, %p509_p2 }
 0x15f   :  { %222 = vmatmul.mubr.f32.vlgmr.msra.gmra.mrb[0].mxu0 %v90_v33  ;;  %385 = vmatprep.mubr.f32.mxu1 %v90_v33  ;;  %v82_v35 = vmul.f32 %v333_v26, %v73_v34 }
 0x160   :  { %227 = vmatprep.mubr.f32.mxu0 %v542_v4 }
 0x161   :  { %v91_v36 = vadd.f32 %v334_v29, %v82_v35 }
 0x163   :  { %228 = vmatmul.mubr.f32.gmra.mrb[2].mxu0 %v91_v36  ;;  %386 = vmatmul.mubr.f32.vlgmr.msra.gmra.mrb[0].mxu1 %v91_v36 }
 0x232   :  { %v223_v44 = vpop.f32.mrb[0].mxu0 }
 0x233   :  { %v224_v32 = vadd.f32 %v223_v44, %v145_v41  ;;  %v225_v45 = vpop.f32.mrb[1].mxu0 }
 0x234   :  { %v226_v47 = vadd.f32 %v225_v45, %v149_v43 }
 0x235   :  { %309 = vst [vmem:[#allocation7] sm:$0xff] %v224_v32 }
 0x236   :  { %310 = vst [vmem:[#allocation7 + $0x8] sm:$0xff] %v226_v47  ;;  %v229_v48 = vpop.f32.mrb[2].mxu0  ;;  %v387_v49 = vpop.f32.mrb[0].mxu1 }
 0x237   :  { %v230_v50 = vadd.f32 %v229_v48, %v145_v41  ;;  %v306_v51 = vadd.f32 %v387_v49, %v153_v46  ;;  %v231_v52 = vpop.f32.mrb[3].mxu0  ;;  %v300_v53 = vpop.f32.mrb[1].mxu1 }
 0x238   :  { %v232_v54 = vadd.f32 %v231_v52, %v149_v43  ;;  %v301_v55 = vadd.f32 %v300_v53, %v153_v46 }
 0x239   :  { %312 = vst [vmem:[#allocation7 + $0x18] sm:$0xff] %v230_v50  ;;  %314 = vst [vmem:[#allocation7 + $0x28] sm:$0xff] %v306_v51 }
 0x23a   :  { %313 = vst [vmem:[#allocation7 + $0x20] sm:$0xff] %v232_v54  ;;  %311 = vst [vmem:[#allocation7 + $0x10] sm:$0xff] %v301_v55 }
 0x23b   :  { %519 = shalt.err (!%p516_p6)
}
 0x23c   :  { %s520_s27 = scalar_lea.hbm %s640_s5, 768 }
 0x23d   :  { %p521_p7 = scmp.ne.s32.totalorder %s640_s5, %s520_s27  ;;  %p524_p8 = scmp.lt.u32.totalorder %s520_s27, %s640_s5 }
 0x23f   :  { %p526_p9 = pnand %p524_p8, %p521_p7 }
 0x241   :  { %529 = shalt.err (!%p526_p9)
}
 0x242   :  { %326 = dma.vmem_to_hbm [thread:$0]  %s321_s24, 768, %s640_s5, [#allocation4], %s540_s0, %s540_s0, %s541_s17  }
 0x243   :  { %534 = dma.done.wait [#allocation4], 768  }
 0x244   :  { %535 = vsyncadd [#allocation4], 4294966528 }
 0x245   :  { %330 = vsyncpa [#allocation3], 1 }
 0x246   :  { %331 = vsyncpa [#allocation6], 1 }
 0x247   :  { %332 = vsyncpa [#allocation4], 1 }

</bundles_post_ra>
